<compile_context>
chip_gen: v5e
topology: v5e:2x2
jax: 0.10.0
libtpu: 0.0.40
codegen_flags: <defaults>
</compile_context>

<pallas_src>
import functools

import jax
import jax.numpy as jnp
from jax.experimental import pallas as pl
from jax.experimental.pallas import tpu as pltpu

_LANE = 128
# ~4 MiB per block: (in + out) x double-buffered = 16 MiB, comfortably under
# v7x's 32 MiB default scoped-VMEM limit (and trivially under v5e/v6e).
_BLOCK_BYTE_BUDGET = 4 * 1024 * 1024


def _copy_kernel(x_ref, o_ref):
    # Identity copy; in/out blocks are shape-identical -> pure unmasked
    # vld/vst stream (no relayout, no rank change inside the kernel).
    o_ref[...] = x_ref[...]


def _sublane_multiple(dtype) -> int:
    # Sub-32-bit dtypes pack along sublanes: f32 -> 8, bf16/f16 -> 16, int8/fp8 -> 32.
    itemsize = jnp.dtype(dtype).itemsize
    return max(8, 32 // itemsize)


def _choose_layout(total: int, sub: int):
    """Padding-free lane-dense (rows, cols) view of a flat length-`total` array.

    Prefers layouts with enough rows for >=2 grid steps (keeps both v7x
    TensorCores busy).  Returns None if no multiple-of-128 column count divides
    `total` exactly (then no copy kernel is launched at all).
    """
    candidates = (2048, 1024, 512, 256, 128)
    for min_rows in (2 * sub, sub, 1):
        for cols in candidates:
            if total % cols == 0 and total // cols >= min_rows:
                return total // cols, cols
    return None


def _choose_row_tile(rows: int, cols: int, itemsize: int, sub: int) -> int:
    if rows <= sub:
        # Single full-extent block along sublanes (full-dim blocks are exempt
        # from the sublane-multiple rule).
        return rows
    # Byte-budget clamp, rounded down to the dtype's sublane multiple.
    budget = max(sub, (_BLOCK_BYTE_BUDGET // (cols * itemsize)) // sub * sub)
    # Aim for at least two grid steps so the "parallel" axis feeds both v7x TCs.
    half = -(-rows // 2)
    two_step = ((half + sub - 1) // sub) * sub
    return max(sub, min(budget, two_step))


@functools.partial(jax.jit, static_argnames=("dim",), donate_argnums=(0,))
def _unsqueeze_copy(x, *, dim):
    out_shape = x.shape[:dim] + (1,) + x.shape[dim:]
    total = x.size
    sub = _sublane_multiple(x.dtype)
    layout = _choose_layout(total, sub)
    if layout is None:
        # No padding-free lane-dense 2D view exists.  Unsqueeze needs zero data
        # movement, so return the free metadata reshape instead of padding
        # (padding + slicing would cost up to 2x extra HBM traffic).
        return x.reshape(out_shape)

    rows, cols = layout
    itemsize = jnp.dtype(x.dtype).itemsize
    tr = _choose_row_tile(rows, cols, itemsize, sub)

    x2d = x.reshape(rows, cols)
    y2d = pl.pallas_call(
        _copy_kernel,
        out_shape=jax.ShapeDtypeStruct((rows, cols), x.dtype),
        grid=(pl.cdiv(rows, tr),),  # ragged last tile is masked by Pallas
        in_specs=[pl.BlockSpec((tr, cols), lambda i: (i, 0))],
        out_specs=pl.BlockSpec((tr, cols), lambda i: (i, 0)),
        input_output_aliases={0: 0},  # P8: reuse the (donated) input HBM buffer
        compiler_params=pltpu.CompilerParams(
            dimension_semantics=("parallel",)),  # megacore-shard the row-tile axis
    )(x2d)
    # The actual "unsqueeze": a free metadata reshape outside the kernel.
    return y2d.reshape(out_shape)


def unsqueeze(x: jax.Array, dim: int, *, materialize: bool = False) -> jax.Array:
    """Pallas equivalent of torch.unsqueeze(x, dim).  `dim` must be static.

    Default path: pure metadata reshape (zero HBM traffic), per the perf review.
    materialize=True routes through the Pallas identity-copy kernel; note that
    this path donates/reuses x's buffer for the output.
    """
    ndim_out = x.ndim + 1
    if dim < 0:
        dim += ndim_out
    if not (0 <= dim < ndim_out):
        raise ValueError(f"dim {dim} out of range for output rank {ndim_out}")

    out_shape = x.shape[:dim] + (1,) + x.shape[dim:]
    if not materialize or x.size == 0:
        return x.reshape(out_shape)
    return _unsqueeze_copy(x, dim=dim)


if __name__ == "__main__":
    key = jax.random.PRNGKey(0)
    x = jax.random.normal(key, (2, 4, 16, 16), dtype=jnp.float32)
    y = 1  # static unsqueeze axis (matches torch.unsqueeze(x, 1))

    ref = jnp.expand_dims(x, y)

    # Default (recommended) path: free metadata reshape, no kernel launch.
    out_meta = jax.block_until_ready(unsqueeze(x, y))
    assert out_meta.shape == (2, 1, 4, 16, 16), out_meta.shape
    assert out_meta.dtype == x.dtype
    assert jnp.array_equal(out_meta, ref)

    # Kernel path: exercise the Pallas identity-copy once (donates x's buffer).
    out_kernel = jax.block_until_ready(unsqueeze(x, y, materialize=True))
    assert out_kernel.shape == (2, 1, 4, 16, 16), out_kernel.shape
    assert out_kernel.dtype == ref.dtype
    assert jnp.array_equal(out_kernel, ref)

    print("KERNEL_OK")
</pallas_src>

<mosaic_0001>
module attributes {stable_mosaic.version = 11 : i64} {
  func.func @_copy_kernel(%arg0: i32, %arg1: memref<8x128xf32, #tpu.memory_space<vmem>>, %arg2: memref<8x128xf32, #tpu.memory_space<vmem>>) attributes {dimension_semantics = [#tpu.dimension_semantics<parallel>], iteration_bounds = array<i64: 2>, scalar_prefetch = 0 : i64, scratch_operands = 0 : i64, tpu.core_type = #tpu.core_type<tc>, window_params = [{transform_indices = @transform_0, window_bounds = array<i64: 8, 128>}, {transform_indices = @transform_1, window_bounds = array<i64: 8, 128>}]} {
    %c0 = arith.constant 0 : index
    %c0_0 = arith.constant 0 : index
    %0 = vector.load %arg1[%c0, %c0_0] : memref<8x128xf32, #tpu.memory_space<vmem>>, vector<8x128xf32>
    %c0_1 = arith.constant 0 : index
    %c0_2 = arith.constant 0 : index
    %1 = vector.load %arg2[%c0_1, %c0_2] : memref<8x128xf32, #tpu.memory_space<vmem>>, vector<8x128xf32>
    tpu.vector_store %arg2[%c0_1, %c0_2], %0 {strides = array<i32>} : memref<8x128xf32, #tpu.memory_space<vmem>>, vector<8x128xf32>,
    return
  }
  func.func @transform_0(%arg0: i32) -> (i32, i32) {
    %c0_i32 = arith.constant 0 : i32
    %c0_i32_0 = arith.constant 0 : i32
    return %arg0, %c0_i32 : i32, i32
  }
  func.func @transform_1(%arg0: i32) -> (i32, i32) {
    %c0_i32 = arith.constant 0 : i32
    %c0_i32_0 = arith.constant 0 : i32
    return %arg0, %c0_i32 : i32, i32
  }
}

</mosaic_0001>

<bundles_post_ra>
// kernel: _unsqueeze_copy.1
= control target key start
LH: loop header
LB: loop body
LE: loop exit
PB: predicated region body
PF: predicated region fallthrough
CT: control target
= control target key end

     0   :  { %s188_s6 = smov 0   ;;  %s208_s0 = inlined_call_operand.vmem [shape: f32[16,128], index: 0, kind: input, shape index: {}, may-alias: {0,1}]   ;;  %s209_s1 = inlined_call_operand.vmem [shape: f32[16,128], index: 1, kind: output, shape index: {}, may-alias: {0,1}]  }
   0x1 LB: > { %s167_s7 = sadd.s32 4294967295, %s190_s6   ;;  %p171_p0 = scmp.ge.s32.totalorder %s190_s6, 1  ;;  %s190_s6 = sphi %s188_s6, %s11_s6  }
   0x2   : > { %p86_p1 = scmp.lt.s32.totalorder %s190_s6, 3 }
   0x4   : > { %p87_p2 = pnand %p171_p0, %p86_p1 }
   0x5   : > { %p104_p3 = scmp.lt.s32.totalorder (!%p87_p2), %s167_s7, 1 }
   0x6   : > { %90 = sbr.rel (%p87_p2) target bundleno = 16 (0x10), region = 24 }
   0xb   : > { %s211_s7 = smov (!%p104_p3, %s167_s7), 1 }
   0xc   : > { %s172_s8 = sshll.u32 %s211_s7, 3 }
   0xd   : > { %s107_s11 = scalar_lea.vmem %s208_s0, %s172_s8  ;;  %s111_s14 = scalar_lea.vmem %s209_s1, %s172_s8 }
   0xe   : > { %v112_v0 = vld [vmem:[%s107_s11] sm:$0xff] }
   0xf   : > { %113 = vst [vmem:[%s111_s14] sm:$0xff] %v112_v0 }
  0x10 PF: > { %s11_s6 = sadd.s32 1, %s190_s6  }
  0x11   : > { %p8_p4 = scmp.ge.s32.totalorder %s11_s6, 4  }
  0x13   :  { %10 = sbr.rel (!%p8_p4) target bundleno = 1 (0x1), region = 54 }

</bundles_post_ra>
